<compile_context>
chip_gen: v7x
topology: tpu7x:2x2x1
jax: 0.10.0
libtpu: 0.0.40
codegen_flags: <defaults>
</compile_context>

<pallas_src>
import jax
import jax.numpy as jnp
from jax.experimental import pallas as pl
from jax.experimental.pallas import tpu as pltpu


def _round_up(x, m):
    return (x + m - 1) // m * m


def _vmem_capacity_bytes():
    try:
        return int(pltpu.get_tpu_info().vmem_capacity_bytes)
    except Exception:
        return 64 * 1024 * 1024          # conservative: v7x per-core VMEM


def _num_tensorcores():
    try:
        info = pltpu.get_tpu_info()
        for attr in ("num_cores", "tensorcore_count", "core_count"):
            v = getattr(info, attr, None)
            if v:
                return int(v)
    except Exception:
        pass
    return 1


def _vmem_limit(needed_bytes, cap_bytes):
    # Generous headroom over the estimated block footprint, capped well below
    # physical VMEM (48 MiB on v7x's 64 MiB, 96 MiB on v5e/v6e's 128 MiB).
    return int(min(int(0.75 * cap_bytes),
                   max(2 * needed_bytes, 32 * 1024 * 1024)))


# ---------------------------------------------------------------------------
# Phase 1: hoisted input projection  P = x @ W_ih^T + (b_ih + b_hh)
#   x_ref:   (MROW, I)    bf16   (rows grouped by timestep)
#   wih_ref: (I, NBLK)    bf16
#   b_ref:   (1, NBLK)    f32
#   p_ref:   (MROW, NBLK) bf16   (bf16 P halves HBM/VMEM traffic)
# ---------------------------------------------------------------------------
def proj_kernel(x_ref, wih_ref, b_ref, p_ref):
    p_ref[...] = (
        jnp.dot(x_ref[...], wih_ref[...], preferred_element_type=jnp.float32)
        + b_ref[...]).astype(p_ref.dtype)


def lstm_model_forward(x_btf, w_ih, w_hh, b_ih, b_hh, w_fc, b_fc,
                       *, time_block=16):
    """x_btf: (B, T, I) like PyTorch batch_first; returns (B, O) in f32."""
    B, T, I = x_btf.shape
    H = w_hh.shape[1]
    O = w_fc.shape[0]

    f32, bf16 = jnp.float32, jnp.bfloat16

    Bp = _round_up(B, 8)      # sublane alignment
    Hp = _round_up(H, 128)    # lane alignment for gate slices
    Op = _round_up(O, 128)    # lane-dense final store
    G = 4 * Hp

    cap = _vmem_capacity_bytes()
    ncores = _num_tensorcores()

    # ---- phase-2 batch tile: split across TensorCores only when >1 TC -----
    if ncores >= 2 and Bp >= 16 and Bp % (8 * ncores) == 0:
        Btile = Bp // ncores
    else:
        Btile = Bp
    nB = Bp // Btile

    # ---- phase-2 time block, VMEM-budgeted for this chip generation -------
    def _p2_bytes(tt):
        return (2 * tt * Btile * G * 2             # P block, dbl-buffered bf16
                + (Hp * G + Hp * Op) * 2 + Op * 4  # weights (single-buffered)
                + 2 * Btile * Hp * 4               # h / c scratch
                + 2 * Btile * Op * 4)              # output block

    TT = max(1, min(time_block, T))
    while TT > 1 and _p2_bytes(TT) > cap // 2:
        TT //= 2
    nT = -(-T // TT)
    Tp = nT * TT                       # ragged tail handled by in-kernel mask
    needs_mask = (Tp != T)

    # ---- phase-1 M/N tiling, decoupled from TT ----------------------------
    MAX_M_ROWS = 512                   # fills 128-wide (v5e) and 256-wide MXUs
    cap_m = max(1, MAX_M_ROWS // (TT * Bp))
    m = 1
    for d in range(1, nT + 1):
        if nT % d == 0 and d <= cap_m:
            m = d
    MROW = TT * m * Bp                 # phase-1 row block (whole timesteps)
    nRow = nT // m
    NBLK = G if G <= 2048 else 512     # G is always a multiple of 512
    nN = G // NBLK

    # ---- padded / transposed parameters (PyTorch gate order [i,f,g,o]) ----
    wih = jnp.pad(w_ih.reshape(4, H, I).astype(f32),
                  ((0, 0), (0, Hp - H), (0, 0))).reshape(G, I)
    wih_t = jnp.transpose(wih).astype(bf16)                        # (I, G)

    whh = jnp.pad(w_hh.reshape(4, H, H).astype(f32),
                  ((0, 0), (0, Hp - H), (0, Hp - H))).reshape(G, Hp)
    whh_t = jnp.transpose(whh).astype(bf16)                        # (Hp, G)

    b = jnp.pad((b_ih + b_hh).reshape(4, H).astype(f32),
                ((0, 0), (0, Hp - H))).reshape(1, G)               # (1, G)

    wfc_t = jnp.transpose(
        jnp.pad(w_fc.astype(f32),
                ((0, Op - O), (0, Hp - H)))).astype(bf16)          # (Hp, Op)
    bfc = jnp.pad(b_fc.astype(f32), (0, Op - O)).reshape(1, Op)    # (1, Op)

    # ---- time-major, padded input (kept in wrapper since I << 4H) ---------
    x = jnp.pad(x_btf.astype(f32), ((0, Bp - B), (0, Tp - T), (0, 0)))
    x_2d = jnp.transpose(x, (1, 0, 2)).reshape(Tp * Bp, I).astype(bf16)

    # ---- phase 1: parallel, pipelined input projection ---------------------
    needed1 = 2 * (MROW * I * 2 + I * NBLK * 2 + NBLK * 4 + MROW * NBLK * 2)
    p_2d = pl.pallas_call(
        proj_kernel,
        out_shape=jax.ShapeDtypeStruct((Tp * Bp, G), bf16),
        grid_spec=pltpu.PrefetchScalarGridSpec(
            num_scalar_prefetch=0,
            grid=(nRow, nN),
            in_specs=[
                pl.BlockSpec((MROW, I), lambda r, n: (r, 0)),      # x rows
                pl.BlockSpec((I, NBLK), lambda r, n: (0, n)),      # W_ih^T
                pl.BlockSpec((1, NBLK), lambda r, n: (0, n)),      # bias
            ],
            out_specs=pl.BlockSpec((MROW, NBLK), lambda r, n: (r, n)),
        ),
        compiler_params=pltpu.CompilerParams(
            dimension_semantics=("parallel", "parallel"),
            vmem_limit_bytes=_vmem_limit(needed1, cap)),
    )(x_2d, wih_t, b)

    p_3d = p_2d.reshape(Tp, Bp, G)     # row-major reshape, no data movement

    # ---- phase 2: sequential recurrence + fused final FC -------------------
    gate_bytes = Btile * G * 4
    unroll_amt = TT if gate_bytes <= 64 * 1024 else max(1, min(TT, 4))

    def recur_kernel(p_ref, whh_ref, wfc_ref, bfc_ref, out_ref, h_ref, c_ref):
        tb = pl.program_id(1)

        @pl.when(tb == 0)
        def _():
            h_ref[...] = jnp.zeros_like(h_ref)
            c_ref[...] = jnp.zeros_like(c_ref)

        def step(i, carry):
            h, c = carry
            gates = (p_ref[i].astype(jnp.float32)
                     + jnp.dot(h.astype(whh_ref.dtype), whh_ref[...],
                               preferred_element_type=jnp.float32))
            # sigmoid(x) = 0.5*tanh(0.5x)+0.5: one EUP pass per gate; the
            # extra mul/add rides free VPU slots.  Gate slices are
            # lane-aligned because Hp is a multiple of 128.
            i_g = 0.5 * jnp.tanh(0.5 * gates[:, 0 * Hp:1 * Hp]) + 0.5
            f_g = 0.5 * jnp.tanh(0.5 * gates[:, 1 * Hp:2 * Hp]) + 0.5
            g_g = jnp.tanh(gates[:, 2 * Hp:3 * Hp])
            o_g = 0.5 * jnp.tanh(0.5 * gates[:, 3 * Hp:4 * Hp]) + 0.5
            c_new = f_g * c + i_g * g_g
            h_new = o_g * jnp.tanh(c_new)
            if needs_mask:                    # ragged last time block only
                valid = (tb * TT + i) < T
                h_new = jnp.where(valid, h_new, h)
                c_new = jnp.where(valid, c_new, c)
            return h_new, c_new

        h, c = jax.lax.fori_loop(0, TT, step, (h_ref[...], c_ref[...]),
                                 unroll=unroll_amt)
        h_ref[...] = h
        c_ref[...] = c

        @pl.when(tb == pl.num_programs(1) - 1)
        def _():
            out_ref[...] = (
                jnp.dot(h.astype(wfc_ref.dtype), wfc_ref[...],
                        preferred_element_type=jnp.float32)
                + bfc_ref[...]).astype(out_ref.dtype)

    limit2 = _vmem_limit(_p2_bytes(TT), cap)

    def run_phase2(single_buffer):
        # Grid-invariant weights: single-buffer to halve their VMEM footprint.
        const_kw = {"pipeline_mode": pl.Buffered(1)} if single_buffer else {}
        out = pl.pallas_call(
            recur_kernel,
            out_shape=jax.ShapeDtypeStruct((Bp, Op), f32),
            grid_spec=pltpu.PrefetchScalarGridSpec(
                num_scalar_prefetch=0,
                grid=(nB, nT),
                in_specs=[
                    pl.BlockSpec((TT, Btile, G), lambda bb, t: (t, bb, 0)),
                    pl.BlockSpec((Hp, G), lambda bb, t: (0, 0), **const_kw),
                    pl.BlockSpec((Hp, Op), lambda bb, t: (0, 0), **const_kw),
                    pl.BlockSpec((1, Op), lambda bb, t: (0, 0), **const_kw),
                ],
                out_specs=pl.BlockSpec((Btile, Op), lambda bb, t: (bb, 0)),
                scratch_shapes=[pltpu.VMEM((Btile, Hp), f32),      # h
                                pltpu.VMEM((Btile, Hp), f32)],     # c
            ),
            compiler_params=pltpu.CompilerParams(
                dimension_semantics=("parallel", "arbitrary"),
                vmem_limit_bytes=limit2),
        )(p_3d, whh_t, wfc_t, bfc)
        return jax.block_until_ready(out)

    try:
        out_full = run_phase2(single_buffer=True)
    except Exception:
        # Fallback if this jax build rejects pipeline_mode=pl.Buffered(1).
        out_full = run_phase2(single_buffer=False)

    return out_full[:B, :O]


def reference_forward(x_btf, w_ih, w_hh, b_ih, b_hh, w_fc, b_fc):
    """Pure-JAX f32 reference matching PyTorch nn.LSTM + nn.Linear."""
    B, T, I = x_btf.shape
    H = w_hh.shape[1]
    h = jnp.zeros((B, H), jnp.float32)
    c = jnp.zeros((B, H), jnp.float32)
    for t in range(T):
        g = x_btf[:, t, :] @ w_ih.T + h @ w_hh.T + b_ih + b_hh
        i_g = jax.nn.sigmoid(g[:, 0 * H:1 * H])
        f_g = jax.nn.sigmoid(g[:, 1 * H:2 * H])
        g_g = jnp.tanh(g[:, 2 * H:3 * H])
        o_g = jax.nn.sigmoid(g[:, 3 * H:4 * H])
        c = f_g * c + i_g * g_g
        h = o_g * jnp.tanh(c)
    return h @ w_fc.T + b_fc


if __name__ == "__main__":
    B, T, I, H, O = 2, 8, 16, 32, 4

    key = jax.random.PRNGKey(0)
    ks = jax.random.split(key, 7)
    scale = 0.1
    x = jax.random.normal(ks[0], (B, T, I), jnp.float32)
    w_ih = scale * jax.random.normal(ks[1], (4 * H, I), jnp.float32)
    w_hh = scale * jax.random.normal(ks[2], (4 * H, H), jnp.float32)
    b_ih = scale * jax.random.normal(ks[3], (4 * H,), jnp.float32)
    b_hh = scale * jax.random.normal(ks[4], (4 * H,), jnp.float32)
    w_fc = scale * jax.random.normal(ks[5], (O, H), jnp.float32)
    b_fc = scale * jax.random.normal(ks[6], (O,), jnp.float32)

    out = lstm_model_forward(x, w_ih, w_hh, b_ih, b_hh, w_fc, b_fc)
    out = jax.block_until_ready(out)

    ref = reference_forward(x, w_ih, w_hh, b_ih, b_hh, w_fc, b_fc)
    assert out.shape == (B, O)
    # bf16 MXU operands + bf16-stored P (f32 accumulation) vs pure-f32
    # reference -> widened tolerance.
    assert jnp.allclose(out, ref, atol=2e-2, rtol=2e-2), (out, ref)

    print("KERNEL_OK")
</pallas_src>

<mosaic_0001>
module attributes {stable_mosaic.version = 11 : i64} {
  func.func @proj_kernel(%arg0: i32, %arg1: i32, %arg2: memref<64x16xbf16, #tpu.memory_space<vmem>>, %arg3: memref<16x512xbf16, #tpu.memory_space<vmem>>, %arg4: memref<1x512xf32, #tpu.memory_space<vmem>>, %arg5: memref<64x512xbf16, #tpu.memory_space<vmem>>) attributes {dimension_semantics = [#tpu.dimension_semantics<parallel>, #tpu.dimension_semantics<parallel>], iteration_bounds = array<i64: 1, 1>, scalar_prefetch = 0 : i64, scratch_operands = 0 : i64, tpu.core_type = #tpu.core_type<tc>, window_params = [{transform_indices = @transform_0, window_bounds = array<i64: 64, 16>}, {transform_indices = @transform_1, window_bounds = array<i64: 16, 512>}, {transform_indices = @transform_2, window_bounds = array<i64: 1, 512>}, {transform_indices = @transform_3, window_bounds = array<i64: 64, 512>}]} {
    %c0 = arith.constant 0 : index
    %c0_0 = arith.constant 0 : index
    %0 = vector.load %arg2[%c0, %c0_0] : memref<64x16xbf16, #tpu.memory_space<vmem>>, vector<64x16xbf16>
    %c0_1 = arith.constant 0 : index
    %c0_2 = arith.constant 0 : index
    %1 = vector.load %arg3[%c0_1, %c0_2] : memref<16x512xbf16, #tpu.memory_space<vmem>>, vector<16x512xbf16>
    %cst = arith.constant dense<0.000000e+00> : vector<64x512xf32>
    %2 = tpu.matmul %0, %1, %cst {dimension_numbers = #tpu.dot_dimension_numbers<[1], [0], [0], [1], [0, 0, 1, 1], [], []>} : vector<64x16xbf16>, vector<16x512xbf16>, vector<64x512xf32> -> vector<64x512xf32>
    %c0_3 = arith.constant 0 : index
    %c0_4 = arith.constant 0 : index
    %3 = vector.load %arg4[%c0_3, %c0_4] : memref<1x512xf32, #tpu.memory_space<vmem>>, vector<1x512xf32>
    %4 = vector.broadcast %3 : vector<1x512xf32> to vector<64x512xf32>
    %5 = arith.addf %2, %4 : vector<64x512xf32>
    %6 = arith.truncf %5 : vector<64x512xf32> to vector<64x512xbf16>
    %c0_5 = arith.constant 0 : index
    %c0_6 = arith.constant 0 : index
    %7 = vector.load %arg5[%c0_5, %c0_6] : memref<64x512xbf16, #tpu.memory_space<vmem>>, vector<64x512xbf16>
    tpu.vector_store %arg5[%c0_5, %c0_6], %6 {strides = array<i32>} : memref<64x512xbf16, #tpu.memory_space<vmem>>, vector<64x512xbf16>,
    return
  }
  func.func @transform_0(%arg0: i32, %arg1: i32) -> (i32, i32) {
    %c0_i32 = arith.constant 0 : i32
    %c0_i32_0 = arith.constant 0 : i32
    return %arg0, %c0_i32 : i32, i32
  }
  func.func @transform_1(%arg0: i32, %arg1: i32) -> (i32, i32) {
    %c0_i32 = arith.constant 0 : i32
    %c0_i32_0 = arith.constant 0 : i32
    return %c0_i32, %arg1 : i32, i32
  }
  func.func @transform_2(%arg0: i32, %arg1: i32) -> (i32, i32) {
    %c0_i32 = arith.constant 0 : i32
    %c0_i32_0 = arith.constant 0 : i32
    return %c0_i32, %arg1 : i32, i32
  }
  func.func @transform_3(%arg0: i32, %arg1: i32) -> (i32, i32) {
    %c0_i32 = arith.constant 0 : i32
    return %arg0, %arg1 : i32, i32
  }
}

</mosaic_0001>

<bundles_post_ra>
// kernel: tpu_custom_call.1
= control target key start
LH: loop header
LB: loop body
LE: loop exit
PB: predicated region body
PF: predicated region fallthrough
CT: control target
= control target key end

     0   :  { %v463_v2 = vmov 0   ;;  %vm90_vm0 = vcmask 130048   ;;  %s574_s0 = inlined_call_operand.vmem [shape: bf16[64,16], index: 0, kind: input, shape index: {}]   ;;  %s575_s1 = inlined_call_operand.vmem [shape: bf16[16,512], index: 1, kind: input, shape index: {}]   ;;  %s576_s2 = inlined_call_operand.vmem [shape: f32[1,512], index: 2, kind: input, shape index: {}]   ;;  %s577_s3 = inlined_call_operand.hbm [shape: bf16[64,512], index: 3, kind: output, shape index: {}]  }
   0x1   :  { %v429_v0 = vld [vmem:[%s575_s1 + $0x4] ss:$16 sps:$4 sm:$0xff]   ;;  %v431_v1 = vld [vmem:[%s575_s1 + $0xc] ss:$16 sps:$4 sm:$0xff]   ;;  %135 = vmatprep.mubr.bf16.mxu0 %v463_v2  ;;  %208 = vmatprep.mubr.bf16.mxu1 %v463_v2  ;;  %v433_v3 = vld [vmem:[%s575_s1] ss:$16 sps:$4 sm:$0xff]  }
   0x2   :  { %103 = vmatprep.subr.bf16.mxu0 %v429_v0  ;;  %v434_v4 = vld [vmem:[%s575_s1 + $0x8] ss:$16 sps:$4 sm:$0xff]   ;;  %176 = vmatprep.subr.bf16.mxu1 %v431_v1  ;;  %v435_v5 = vld [vmem:[%s574_s0] sm:$0xff]  }
   0x3   :  { %104 = vmatpush1.bf16.msra.mxu0 %v433_v3  ;;  %177 = vmatpush1.bf16.msra.mxu1 %v434_v4 }
   0x6   :  { %385 = vmatmul.mubr.msk.bf16.vlgmr.msra.gmra.mrb[0].mxu0 %vm90_vm0, %v435_v5  ;;  %389 = vmatmul.mubr.msk.bf16.vlgmr.msra.gmra.mrb[0].mxu1 %vm90_vm0, %v435_v5 }
   0x7   :  { %8 = vsyncpa [#allocation3], 0  ;;  %145 = vmatprep.mubr.bf16.mxu0 %v463_v2  ;;  %218 = vmatprep.mubr.bf16.mxu1 %v463_v2  ;;  %v436_v6 = vld [vmem:[%s574_s0 + $0x8] sm:$0xff]   ;;  %v437_v7 = vld [vmem:[%s574_s0 + $0x10] sm:$0xff]   ;;  %v30_v9 = vlaneseq }
   0x8   :  { %v438_v8 = vld [vmem:[%s574_s0 + $0x18] sm:$0xff]   ;;  %v28_v13 = vld [vmem:[%s576_s2] sm:$0xf]  ;;  %s464_s0 = smov [#allocation2]  }
   0x9   :  { %v31_v10 = vshrl.u32 %v30_v9, 7  ;;  %s366_s2 = sshll.u32 %s464_s0, 4  ;;  %s367_s2 = int_to_ptr.vmem [resolvable:$true] %s366_s2 }
   0xa   :  { %s439_s29 = scalar_lea.vmem %s367_s2, 2048  ;;  %p444_p1 = scmp.lt.s32.totalorder %s367_s2, %s367_s2 }
   0xb   :  { %v32_v11 = vsub.s32 0, %v31_v10  ;;  %v40_v12 = vsub.s32 2, %v31_v10  ;;  %v36_v14 = vsub.s32 1, %v31_v10  ;;  %v44_v15 = vsub.s32 3, %v31_v10  ;;  %p440_p0 = scmp.ne.s32.totalorder %s367_s2, %s439_s29  ;;  %p445_p2 = scmp.lt.s32.totalorder %s439_s29, %s439_s29 }
   0xd   :  { %v522_v16 = vrot.slane %v28_v13, %v32_v11  ;;  %v524_v17 = vrot.slane %v28_v13, %v40_v12  ;;  %v526_v18 = vrot.slane %v28_v13, %v36_v14  ;;  %v528_v19 = vrot.slane %v28_v13, %v44_v15  ;;  %p446_p3 = por %p445_p2, %p444_p1 }
   0xe   :  { %386 = vmatmul.mubr.msk.bf16.gmra.mrb[4].mxu0 %vm90_vm0, %v436_v6  ;;  %390 = vmatmul.mubr.msk.bf16.gmra.mrb[4].mxu1 %vm90_vm0, %v436_v6 }
   0xf   :  { %155 = vmatprep.mubr.bf16.mxu0 %v463_v2  ;;  %228 = vmatprep.mubr.bf16.mxu1 %v463_v2  ;;  %p447_p4 = pnand %p446_p3, %p440_p0 }
  0x16   :  { %387 = vmatmul.mubr.msk.bf16.gmra.mrb[8].mxu0 %vm90_vm0, %v437_v7  ;;  %391 = vmatmul.mubr.msk.bf16.gmra.mrb[8].mxu1 %vm90_vm0, %v437_v7 }
  0x17   :  { %165 = vmatprep.mubr.bf16.mxu0 %v463_v2  ;;  %238 = vmatprep.mubr.bf16.mxu1 %v463_v2 }
  0x1e   :  { %388 = vmatmul.mubr.msk.bf16.gmra.mrb[12].mxu0 %vm90_vm0, %v438_v8  ;;  %392 = vmatmul.mubr.msk.bf16.gmra.mrb[12].mxu1 %vm90_vm0, %v438_v8 }
  0xd9   :  { %v137_v20 = vpop.f32.mrb[0].mxu0  ;;  %v210_v21 = vpop.f32.mrb[0].mxu1 }
  0xda   :  { %v138_v22 = vadd.f32 %v137_v20, %v522_v16  ;;  %v211_v23 = vadd.f32 %v210_v21, %v524_v17  ;;  %v139_v24 = vpop.f32.mrb[1].mxu0  ;;  %v212_v25 = vpop.f32.mrb[1].mxu1 }
  0xdb   :  { %v140_v26 = vadd.f32 %v139_v24, %v526_v18  ;;  %v213_v27 = vadd.f32 %v212_v25, %v528_v19  ;;  %v141_v28 = vpop.f32.mrb[2].mxu0  ;;  %v214_v29 = vpop.f32.mrb[2].mxu1 }
  0xdc   :  { %v142_v30 = vadd.f32 %v141_v28, %v522_v16  ;;  %v215_v31 = vadd.f32 %v214_v29, %v524_v17  ;;  %v143_v32 = vpop.f32.mrb[3].mxu0  ;;  %v216_v33 = vpop.f32.mrb[3].mxu1 }
  0xdd   :  { %v409_v34 = vpack.c.bf16 %v140_v26, %v138_v22  ;;  %v410_v35 = vpack.c.bf16 %v213_v27, %v211_v23  ;;  %v144_v36 = vadd.f32 %v143_v32, %v526_v18  ;;  %v217_v37 = vadd.f32 %v216_v33, %v528_v19 }
  0xdf   :  { %345 = vst [vmem:[#allocation2] sm:$0xff] %v409_v34  ;;  %346 = vst [vmem:[#allocation2 + $0x8] sm:$0xff] %v410_v35  ;;  %v411_v38 = vpack.c.bf16 %v144_v36, %v142_v30  ;;  %v412_v39 = vpack.c.bf16 %v217_v37, %v215_v31 }
  0xe1   :  { %347 = vst [vmem:[#allocation2 + $0x10] sm:$0xff] %v411_v38  ;;  %348 = vst [vmem:[#allocation2 + $0x18] sm:$0xff] %v412_v39  ;;  %v147_v40 = vpop.f32.mrb[4].mxu0  ;;  %v220_v41 = vpop.f32.mrb[4].mxu1 }
  0xe2   :  { %v148_v42 = vadd.f32 %v147_v40, %v522_v16  ;;  %v221_v43 = vadd.f32 %v220_v41, %v524_v17  ;;  %v149_v44 = vpop.f32.mrb[5].mxu0  ;;  %v222_v45 = vpop.f32.mrb[5].mxu1 }
  0xe3   :  { %v150_v46 = vadd.f32 %v149_v44, %v526_v18  ;;  %v223_v47 = vadd.f32 %v222_v45, %v528_v19  ;;  %v151_v48 = vpop.f32.mrb[6].mxu0  ;;  %v224_v49 = vpop.f32.mrb[6].mxu1 }
  0xe4   :  { %v152_v50 = vadd.f32 %v151_v48, %v522_v16  ;;  %v225_v51 = vadd.f32 %v224_v49, %v524_v17  ;;  %v153_v52 = vpop.f32.mrb[7].mxu0  ;;  %v226_v53 = vpop.f32.mrb[7].mxu1 }
  0xe5   :  { %v413_v54 = vpack.c.bf16 %v150_v46, %v148_v42  ;;  %v414_v55 = vpack.c.bf16 %v223_v47, %v221_v43  ;;  %v154_v56 = vadd.f32 %v153_v52, %v526_v18  ;;  %v227_v57 = vadd.f32 %v226_v53, %v528_v19 }
  0xe7   :  { %349 = vst [vmem:[#allocation2 + $0x20] sm:$0xff] %v413_v54  ;;  %350 = vst [vmem:[#allocation2 + $0x28] sm:$0xff] %v414_v55  ;;  %v415_v58 = vpack.c.bf16 %v154_v56, %v152_v50  ;;  %v416_v59 = vpack.c.bf16 %v227_v57, %v225_v51 }
  0xe9   :  { %351 = vst [vmem:[#allocation2 + $0x30] sm:$0xff] %v415_v58  ;;  %352 = vst [vmem:[#allocation2 + $0x38] sm:$0xff] %v416_v59  ;;  %v157_v60 = vpop.f32.mrb[8].mxu0  ;;  %v230_v61 = vpop.f32.mrb[8].mxu1 }
  0xea   :  { %v158_v62 = vadd.f32 %v157_v60, %v522_v16  ;;  %v231_v63 = vadd.f32 %v230_v61, %v524_v17  ;;  %v159_v0 = vpop.f32.mrb[9].mxu0  ;;  %v232_v1 = vpop.f32.mrb[9].mxu1 }
  0xeb   :  { %v160_v2 = vadd.f32 %v159_v0, %v526_v18  ;;  %v233_v3 = vadd.f32 %v232_v1, %v528_v19  ;;  %v161_v4 = vpop.f32.mrb[10].mxu0  ;;  %v234_v5 = vpop.f32.mrb[10].mxu1 }
  0xec   :  { %v162_v6 = vadd.f32 %v161_v4, %v522_v16  ;;  %v235_v7 = vadd.f32 %v234_v5, %v524_v17  ;;  %v163_v8 = vpop.f32.mrb[11].mxu0  ;;  %v236_v9 = vpop.f32.mrb[11].mxu1 }
  0xed   :  { %v417_v10 = vpack.c.bf16 %v160_v2, %v158_v62  ;;  %v418_v11 = vpack.c.bf16 %v233_v3, %v231_v63  ;;  %v164_v12 = vadd.f32 %v163_v8, %v526_v18  ;;  %v237_v13 = vadd.f32 %v236_v9, %v528_v19 }
  0xef   :  { %353 = vst [vmem:[#allocation2 + $0x40] sm:$0xff] %v417_v10  ;;  %354 = vst [vmem:[#allocation2 + $0x48] sm:$0xff] %v418_v11  ;;  %v419_v14 = vpack.c.bf16 %v164_v12, %v162_v6  ;;  %v420_v15 = vpack.c.bf16 %v237_v13, %v235_v7 }
  0xf1   :  { %355 = vst [vmem:[#allocation2 + $0x50] sm:$0xff] %v419_v14  ;;  %356 = vst [vmem:[#allocation2 + $0x58] sm:$0xff] %v420_v15  ;;  %v167_v20 = vpop.f32.mrb[12].mxu0  ;;  %v240_v21 = vpop.f32.mrb[12].mxu1 }
  0xf2   :  { %v168_v22 = vadd.f32 %v167_v20, %v522_v16  ;;  %v241_v23 = vadd.f32 %v240_v21, %v524_v17  ;;  %v169_v24 = vpop.f32.mrb[13].mxu0  ;;  %v242_v25 = vpop.f32.mrb[13].mxu1 }
  0xf3   :  { %v170_v26 = vadd.f32 %v169_v24, %v526_v18  ;;  %v243_v27 = vadd.f32 %v242_v25, %v528_v19  ;;  %v171_v28 = vpop.f32.mrb[14].mxu0  ;;  %v244_v29 = vpop.f32.mrb[14].mxu1 }
  0xf4   :  { %v172_v30 = vadd.f32 %v171_v28, %v522_v16  ;;  %v245_v31 = vadd.f32 %v244_v29, %v524_v17  ;;  %v173_v32 = vpop.f32.mrb[15].mxu0  ;;  %v246_v33 = vpop.f32.mrb[15].mxu1 }
  0xf5   :  { %v421_v34 = vpack.c.bf16 %v170_v26, %v168_v22  ;;  %v422_v35 = vpack.c.bf16 %v243_v27, %v241_v23  ;;  %v174_v36 = vadd.f32 %v173_v32, %v526_v18  ;;  %v247_v37 = vadd.f32 %v246_v33, %v528_v19 }
  0xf7   :  { %357 = vst [vmem:[#allocation2 + $0x60] sm:$0xff] %v421_v34  ;;  %358 = vst [vmem:[#allocation2 + $0x68] sm:$0xff] %v422_v35  ;;  %v423_v38 = vpack.c.bf16 %v174_v36, %v172_v30  ;;  %v424_v39 = vpack.c.bf16 %v247_v37, %v245_v31 }
  0xf9   :  { %359 = vst [vmem:[#allocation2 + $0x70] sm:$0xff] %v423_v38  ;;  %360 = vst [vmem:[#allocation2 + $0x78] sm:$0xff] %v424_v39 }
  0xfa   :  { %450 = shalt.err (!%p447_p4)
}
  0xfb   :  { %s451_s5 = scalar_lea.hbm %s577_s3, 2048 }
  0xfc   :  { %p452_p5 = scmp.ne.s32.totalorder %s577_s3, %s451_s5  ;;  %p455_p6 = scmp.lt.u32.totalorder %s451_s5, %s577_s3 }
  0xfe   :  { %p457_p7 = pnand %p455_p6, %p452_p5 }
 0x100   :  { %460 = shalt.err (!%p457_p7)
}
 0x101   :  { %s465_s10 = smov 256   ;;  %s466_s11 = smov 16  }
 0x102   :  { %372 = dma.vmem_to_hbm [thread:$0]  %s367_s2, 2048, %s577_s3, [#allocation3], %s465_s10, %s465_s10, %s466_s11  }
 0x103   :  { %461 = dma.done.wait [#allocation3], 2048  }
 0x104   :  { %462 = vsyncadd [#allocation3], 4294965248 }
 0x105   :  { %376 = vsyncpa [#allocation3], 1 }

</bundles_post_ra>
